<compile_context>
chip_gen: v6e
topology: v6e:2x2x1
jax: 0.10.0
libtpu: 0.0.40
codegen_flags: <defaults>
</compile_context>

<pallas_src>
import jax
import jax.numpy as jnp
from jax.experimental import pallas as pl
from jax.experimental.pallas import tpu as pltpu

FEAT_C = 960      # MobileNetV3-Large feature channels (fixed by Linear(960, 128))
HASH_BITS = 128   # hash code width


def _hash_head_kernel(x_ref, w_ref, b_ref, o_ref):
    """Fused AdaptiveAvgPool2d((1,1)) + Flatten + Linear + Tanh for one batch tile.

    x_ref: (TILE_N, HW, C)   backbone features, bf16 (or f32), spatial flattened
    w_ref: (C, HASH_BITS)    f32, transposed nn.Linear weight pre-scaled by 1/HW
    b_ref: (1, HASH_BITS)    f32 bias
    o_ref: (TILE_N, HASH_BITS) f32
    """
    # Global average pool == sum over the flattened spatial axis; accumulate in
    # f32 (input may be bf16).  The 1/HW scale is already folded into w_ref.
    pooled = jnp.sum(x_ref[...].astype(jnp.float32), axis=1)            # (TILE_N, C)
    # nn.Linear(960, 128) on the MXU: y = pooled @ (W.T / HW) + b
    y = jnp.dot(pooled, w_ref[...], preferred_element_type=jnp.float32)  # (TILE_N, 128)
    o_ref[...] = jnp.tanh(y + b_ref[...])


def neural_hash_head(feats_nhwc, w, b, *, tile_n=64):
    """Hash head applied to backbone features.

    feats_nhwc: (N, H, W, C=960) channels-last feature map (bf16 recommended).
                The frozen backbone should emit NHWC (natural JAX conv layout),
                so no transpose is ever materialized.
    w:          (128, 960) nn.Linear weight (PyTorch layout).
    b:          (128,)     nn.Linear bias.
    Returns (N, 128) float32 hash codes in (-1, 1).
    """
    n, h, wd, c = feats_nhwc.shape
    assert c == FEAT_C, f"expected {FEAT_C} feature channels, got {c}"
    hw = h * wd

    # Free, contiguous reshape: (N, H, W, C) -> (N, HW, C).
    x = feats_nhwc.reshape(n, hw, c)

    # Fold the average-pool 1/HW scale into the (transposed) weight once.
    w_t = (jnp.transpose(w).astype(jnp.float32) * (1.0 / float(hw)))   # (960, 128)
    b_row = b.astype(jnp.float32).reshape(1, HASH_BITS)                # (1, 128)

    tile_n = min(tile_n, n)
    grid = (pl.cdiv(n, tile_n),)

    return pl.pallas_call(
        _hash_head_kernel,
        out_shape=jax.ShapeDtypeStruct((n, HASH_BITS), jnp.float32),
        grid=grid,
        in_specs=[
            # Feature map: tiled over batch only, double-buffered by Pallas.
            pl.BlockSpec((tile_n, hw, c), lambda i: (i, 0, 0)),
            # Weights / bias: constant block index -> stay resident in VMEM.
            pl.BlockSpec((FEAT_C, HASH_BITS), lambda i: (0, 0)),
            pl.BlockSpec((1, HASH_BITS), lambda i: (0, 0)),
        ],
        out_specs=pl.BlockSpec((tile_n, HASH_BITS), lambda i: (i, 0)),
        compiler_params=pltpu.CompilerParams(
            # Batch tiles are independent -> megacore sharding on v7x (no-op
            # on v5e/v6e, harmless).
            dimension_semantics=("parallel",),
            # Headroom for large HW / tiles; still well under v7x physical VMEM.
            vmem_limit_bytes=48 * 1024 * 1024,
        ),
    )(x, w_t, b_row)


if __name__ == "__main__":
    key = jax.random.PRNGKey(0)
    k_feat, k_w, k_b = jax.random.split(key, 3)

    # Small demo shapes: batch=2, backbone feature map (N, H=4, W=4, C=960), bf16.
    N, H, W = 2, 4, 4
    feats_nhwc = jax.random.normal(
        k_feat, (N, H, W, FEAT_C), dtype=jnp.float32
    ).astype(jnp.bfloat16)

    # Deterministic nn.Linear(960, 128) init (PyTorch default U(-1/sqrt(in), 1/sqrt(in))).
    bound = 1.0 / jnp.sqrt(jnp.float32(FEAT_C))
    w = jax.random.uniform(k_w, (HASH_BITS, FEAT_C), jnp.float32, -bound, bound)
    b = jax.random.uniform(k_b, (HASH_BITS,), jnp.float32, -bound, bound)

    out = jax.block_until_ready(neural_hash_head(feats_nhwc, w, b))

    # Pure-JAX reference (same bf16 features, f32 math).
    feats_f32 = feats_nhwc.astype(jnp.float32)
    pooled_ref = jnp.mean(feats_f32, axis=(1, 2))          # (N, 960)
    ref = jnp.tanh(pooled_ref @ w.T + b)                   # (N, 128)

    assert out.shape == (N, HASH_BITS) and out.dtype == jnp.float32
    assert jnp.allclose(out, ref, atol=1e-3, rtol=1e-3), float(
        jnp.max(jnp.abs(out - ref))
    )

    print("KERNEL_OK")
</pallas_src>

<mosaic_0001>
module attributes {stable_mosaic.version = 11 : i64} {
  func.func @_hash_head_kernel(%arg0: i32, %arg1: memref<2x16x960xbf16, #tpu.memory_space<vmem>>, %arg2: memref<960x128xf32, #tpu.memory_space<vmem>>, %arg3: memref<1x128xf32, #tpu.memory_space<vmem>>, %arg4: memref<2x128xf32, #tpu.memory_space<vmem>>) attributes {dimension_semantics = [#tpu.dimension_semantics<parallel>], iteration_bounds = array<i64: 1>, scalar_prefetch = 0 : i64, scratch_operands = 0 : i64, tpu.core_type = #tpu.core_type<tc>, window_params = [{transform_indices = @transform_0, window_bounds = array<i64: 2, 16, 960>}, {pipeline_mode = #tpu.pipeline_mode<synchronous>, transform_indices = @transform_1, window_bounds = array<i64: 960, 128>}, {pipeline_mode = #tpu.pipeline_mode<synchronous>, transform_indices = @transform_2, window_bounds = array<i64: 1, 128>}, {transform_indices = @transform_3, window_bounds = array<i64: 2, 128>}]} {
    %c0 = arith.constant 0 : index
    %c0_0 = arith.constant 0 : index
    %c0_1 = arith.constant 0 : index
    %0 = vector.load %arg1[%c0, %c0_0, %c0_1] : memref<2x16x960xbf16, #tpu.memory_space<vmem>>, vector<2x16x960xbf16>
    %1 = arith.extf %0 : vector<2x16x960xbf16> to vector<2x16x960xf32>
    %cst = arith.constant dense<0.000000e+00> : vector<2x960xf32>
    %2 = vector.multi_reduction <add>, %1, %cst [1] : vector<2x16x960xf32> to vector<2x960xf32>
    %c0_2 = arith.constant 0 : index
    %c0_3 = arith.constant 0 : index
    %3 = vector.load %arg2[%c0_2, %c0_3] : memref<960x128xf32, #tpu.memory_space<vmem>>, vector<960x128xf32>
    %cst_4 = arith.constant dense<0.000000e+00> : vector<2x128xf32>
    %4 = tpu.matmul %2, %3, %cst_4 {dimension_numbers = #tpu.dot_dimension_numbers<[1], [0], [0], [1], [0, 0, 1, 1], [], []>} : vector<2x960xf32>, vector<960x128xf32>, vector<2x128xf32> -> vector<2x128xf32>
    %c0_5 = arith.constant 0 : index
    %c0_6 = arith.constant 0 : index
    %5 = vector.load %arg3[%c0_5, %c0_6] : memref<1x128xf32, #tpu.memory_space<vmem>>, vector<1x128xf32>
    %6 = vector.broadcast %5 : vector<1x128xf32> to vector<2x128xf32>
    %7 = arith.addf %4, %6 : vector<2x128xf32>
    %8 = math.tanh %7 : vector<2x128xf32>
    %c0_7 = arith.constant 0 : index
    %c0_8 = arith.constant 0 : index
    %9 = vector.load %arg4[%c0_7, %c0_8] : memref<2x128xf32, #tpu.memory_space<vmem>>, vector<2x128xf32>
    tpu.vector_store %arg4[%c0_7, %c0_8], %8 {strides = array<i32>} : memref<2x128xf32, #tpu.memory_space<vmem>>, vector<2x128xf32>,
    return
  }
  func.func @transform_0(%arg0: i32) -> (i32, i32, i32) {
    %c0_i32 = arith.constant 0 : i32
    %c0_i32_0 = arith.constant 0 : i32
    %c0_i32_1 = arith.constant 0 : i32
    return %arg0, %c0_i32, %c0_i32_0 : i32, i32, i32
  }
  func.func @transform_1(%arg0: i32) -> (i32, i32) {
    %c0_i32 = arith.constant 0 : i32
    %c0_i32_0 = arith.constant 0 : i32
    %c0_i32_1 = arith.constant 0 : i32
    return %c0_i32, %c0_i32_0 : i32, i32
  }
  func.func @transform_2(%arg0: i32) -> (i32, i32) {
    %c0_i32 = arith.constant 0 : i32
    %c0_i32_0 = arith.constant 0 : i32
    %c0_i32_1 = arith.constant 0 : i32
    return %c0_i32, %c0_i32_0 : i32, i32
  }
  func.func @transform_3(%arg0: i32) -> (i32, i32) {
    %c0_i32 = arith.constant 0 : i32
    %c0_i32_0 = arith.constant 0 : i32
    return %arg0, %c0_i32 : i32, i32
  }
}

</mosaic_0001>

<bundles_post_ra>
// kernel: tpu_custom_call.1
= control target key start
LH: loop header
LB: loop body
LE: loop exit
PB: predicated region body
PF: predicated region fallthrough
CT: control target
= control target key end

     0   :  { %8 = vsyncpa [#allocation3], 0  ;;  %s943_s0 = inlined_call_operand.hbm [shape: bf16[2,16,960], index: 0, kind: input, shape index: {}]   ;;  %s944_s1 = inlined_call_operand.hbm [shape: f32[960,128], index: 1, kind: input, shape index: {}]   ;;  %s945_s2 = inlined_call_operand.vmem [shape: f32[1,128], index: 2, kind: input, shape index: {}]   ;;  %s946_s3 = inlined_call_operand.hbm [shape: f32[2,128], index: 3, kind: output, shape index: {}]  }
   0x1   :  { %9 = vsyncpa [#allocation6], 0 }
   0x2   :  { %10 = vsyncpa [#allocation4], 0  ;;  %s850_s12 = smov [#allocation2]  }
   0x3   :  { %s16_s13 = sshll.u32 %s850_s12, 4  ;;  %s17_s13 = int_to_ptr.vmem [resolvable:$true] %s16_s13 }
   0x4   :  { %s792_s14 = scalar_lea.vmem %s17_s13, 2048  ;;  %p797_p1 = scmp.lt.s32.totalorder %s17_s13, %s17_s13 }
   0x5   :  { %p793_p0 = scmp.ne.s32.totalorder %s17_s13, %s792_s14  ;;  %p798_p2 = scmp.lt.s32.totalorder %s792_s14, %s792_s14 }
   0x7   :  { %p799_p3 = por %p798_p2, %p797_p1 }
   0x9   :  { %p800_p4 = pnand %p799_p3, %p793_p0 }
   0xb   :  { %803 = shalt.err (!%p800_p4)
}
   0xc   :  { %s851_s15 = smov 512   ;;  %s852_s16 = smov 32  }
   0xd   :  { %22 = dma.hbm_to_vmem [thread:$0]  %s943_s0, 2048, %s17_s13, [#allocation3], %s851_s15, %s851_s15, %s852_s16  }
   0xe   :  { %s853_s19 = smov [#allocation5]  }
   0xf   :  { %s28_s20 = sshll.u32 %s853_s19, 4  ;;  %s29_s20 = int_to_ptr.vmem [resolvable:$true] %s28_s20 }
  0x10   :  { %s812_s21 = scalar_lea.vmem %s29_s20, 15360  ;;  %p817_p6 = scmp.lt.s32.totalorder %s29_s20, %s29_s20 }
  0x11   :  { %p813_p5 = scmp.ne.s32.totalorder %s29_s20, %s812_s21  ;;  %p818_p7 = scmp.lt.s32.totalorder %s812_s21, %s812_s21 }
  0x13   :  { %p819_p8 = por %p818_p7, %p817_p6 }
  0x15   :  { %p820_p9 = pnand %p819_p8, %p813_p5 }
  0x17   :  { %823 = shalt.err (!%p820_p9)
}
  0x18   :  { %s854_s22 = smov 128   ;;  %s855_s23 = smov 8  }
  0x19   :  { %34 = dma.hbm_to_vmem [thread:$0]  %s944_s1, 15360, %s29_s20, [#allocation6], %s854_s22, %s854_s22, %s855_s23  }
  0x1a   :  { %844 = dma.done.wait [#allocation3], 2048  }
  0x1b   :  { %845 = vsyncadd [#allocation3], 4294965248 }
  0x1c   :  { %846 = dma.done.wait [#allocation6], 15360  }
  0x1d   :  { %847 = vsyncadd [#allocation6], 4294951936  ;;  %v239_v0 = vld [vmem:[#allocation5 + $0xf8] sm:$0xff]  ;;  %v238_v4 = vld [vmem:[#allocation5 + $0xf0] sm:$0xff]  ;;  %vm351_vm0 = vcmask 1041409   ;;  %vm140_vm1 = vcmask 523264  }
  0x1e   :  { %v271_v1 = vld [vmem:[#allocation5 + $0x1f8] sm:$0xff]  ;;  %669 = vmatprep.subr.mxu0 %v239_v0  ;;  %v270_v5 = vld [vmem:[#allocation5 + $0x1f0] sm:$0xff]  ;;  %v237_v8 = vld [vmem:[#allocation5 + $0xe8] sm:$0xff]  ;;  %s857_s26 = smov [#allocation7]  }
  0x1f   :  { %v223_v2 = vld [vmem:[#allocation5 + $0x78] sm:$0xff]  ;;  %704 = vmatprep.subr.mxu1 %v271_v1  ;;  %v222_v6 = vld [vmem:[#allocation5 + $0x70] sm:$0xff]  ;;  %v269_v9 = vld [vmem:[#allocation5 + $0x1e8] sm:$0xff]  ;;  %s657_s27 = sshll.u32 %s857_s26, 4  ;;  %s658_s27 = int_to_ptr.vmem [resolvable:$true] %s657_s27 }
  0x20   :  { %v255_v3 = vld [vmem:[#allocation5 + $0x178] sm:$0xff]  ;;  %670 = vmatpush3.msra.mxu0 %v223_v2  ;;  %v254_v7 = vld [vmem:[#allocation5 + $0x170] sm:$0xff]  ;;  %v221_v10 = vld [vmem:[#allocation5 + $0x68] sm:$0xff]  ;;  %s824_s28 = scalar_lea.vmem %s658_s27, 32  ;;  %p829_p11 = scmp.lt.s32.totalorder %s658_s27, %s658_s27 }
  0x21   :  { %705 = vmatpush3.msra.mxu1 %v255_v3  ;;  %671 = vmatprep.subr.mxu0 %v238_v4  ;;  %v253_v11 = vld [vmem:[#allocation5 + $0x168] sm:$0xff]  ;;  %v236_v12 = vld [vmem:[#allocation5 + $0xe0] sm:$0xff]  ;;  %v235_v16 = vld [vmem:[#allocation5 + $0xd8] sm:$0xff]  ;;  %p825_p10 = scmp.ne.s32.totalorder %s658_s27, %s824_s28  ;;  %p830_p12 = scmp.lt.s32.totalorder %s824_s28, %s824_s28 }
  0x22   :  { %706 = vmatprep.subr.mxu1 %v270_v5  ;;  %672 = vmatpush3.msra.mxu0 %v222_v6  ;;  %v268_v13 = vld [vmem:[#allocation5 + $0x1e0] sm:$0xff]  ;;  %v267_v17 = vld [vmem:[#allocation5 + $0x1d8] sm:$0xff]  ;;  %v234_v20 = vld [vmem:[#allocation5 + $0xd0] sm:$0xff] }
  0x23   :  { %707 = vmatpush3.msra.mxu1 %v254_v7  ;;  %673 = vmatprep.subr.mxu0 %v237_v8  ;;  %v220_v14 = vld [vmem:[#allocation5 + $0x60] sm:$0xff]  ;;  %v219_v18 = vld [vmem:[#allocation5 + $0x58] sm:$0xff]  ;;  %v266_v21 = vld [vmem:[#allocation5 + $0x1d0] sm:$0xff]  ;;  %p831_p13 = por %p830_p12, %p829_p11 }
  0x24   :  { %708 = vmatprep.subr.mxu1 %v269_v9  ;;  %v252_v15 = vld [vmem:[#allocation5 + $0x160] sm:$0xff]  ;;  %674 = vmatpush3.msra.mxu0 %v221_v10  ;;  %v251_v19 = vld [vmem:[#allocation5 + $0x158] sm:$0xff]  ;;  %v218_v22 = vld [vmem:[#allocation5 + $0x50] sm:$0xff] }
  0x25   :  { %709 = vmatpush3.msra.mxu1 %v253_v11  ;;  %675 = vmatprep.subr.mxu0 %v236_v12  ;;  %v250_v23 = vld [vmem:[#allocation5 + $0x150] sm:$0xff]  ;;  %v233_v24 = vld [vmem:[#allocation5 + $0xc8] sm:$0xff]  ;;  %v232_v28 = vld [vmem:[#allocation5 + $0xc0] sm:$0xff]  ;;  %p832_p0 = pnand %p831_p13, %p825_p10 }
  0x26   :  { %710 = vmatprep.subr.mxu1 %v268_v13  ;;  %676 = vmatpush3.msra.mxu0 %v220_v14  ;;  %v265_v25 = vld [vmem:[#allocation5 + $0x1c8] sm:$0xff]  ;;  %v264_v29 = vld [vmem:[#allocation5 + $0x1c0] sm:$0xff]  ;;  %v231_v32 = vld [vmem:[#allocation5 + $0xb8] sm:$0xff] }
  0x27   :  { %711 = vmatpush3.msra.mxu1 %v252_v15  ;;  %677 = vmatprep.subr.mxu0 %v235_v16  ;;  %v217_v26 = vld [vmem:[#allocation5 + $0x48] sm:$0xff]  ;;  %v216_v30 = vld [vmem:[#allocation5 + $0x40] sm:$0xff]  ;;  %v263_v33 = vld [vmem:[#allocation5 + $0x1b8] sm:$0xff] }
  0x28   :  { %712 = vmatprep.subr.mxu1 %v267_v17  ;;  %678 = vmatpush3.msra.mxu0 %v219_v18  ;;  %v249_v27 = vld [vmem:[#allocation5 + $0x148] sm:$0xff]  ;;  %v248_v31 = vld [vmem:[#allocation5 + $0x140] sm:$0xff]  ;;  %v215_v34 = vld [vmem:[#allocation5 + $0x38] sm:$0xff] }
  0x29   :  { %713 = vmatpush3.msra.mxu1 %v251_v19  ;;  %679 = vmatprep.subr.mxu0 %v234_v20  ;;  %v247_v35 = vld [vmem:[#allocation5 + $0x138] sm:$0xff]  ;;  %v230_v36 = vld [vmem:[#allocation5 + $0xb0] sm:$0xff]  ;;  %v229_v40 = vld [vmem:[#allocation5 + $0xa8] sm:$0xff] }
  0x2a   :  { %714 = vmatprep.subr.mxu1 %v266_v21  ;;  %680 = vmatpush3.msra.mxu0 %v218_v22  ;;  %v262_v37 = vld [vmem:[#allocation5 + $0x1b0] sm:$0xff]  ;;  %v261_v41 = vld [vmem:[#allocation5 + $0x1a8] sm:$0xff]  ;;  %v228_v44 = vld [vmem:[#allocation5 + $0xa0] sm:$0xff] }
  0x2b   :  { %715 = vmatpush3.msra.mxu1 %v250_v23  ;;  %681 = vmatprep.subr.mxu0 %v233_v24  ;;  %v214_v38 = vld [vmem:[#allocation5 + $0x30] sm:$0xff]  ;;  %v213_v42 = vld [vmem:[#allocation5 + $0x28] sm:$0xff]  ;;  %v260_v45 = vld [vmem:[#allocation5 + $0x1a0] sm:$0xff] }
  0x2c   :  { %716 = vmatprep.subr.mxu1 %v265_v25  ;;  %682 = vmatpush3.msra.mxu0 %v217_v26  ;;  %v246_v39 = vld [vmem:[#allocation5 + $0x130] sm:$0xff]  ;;  %v245_v43 = vld [vmem:[#allocation5 + $0x128] sm:$0xff]  ;;  %v212_v46 = vld [vmem:[#allocation5 + $0x20] sm:$0xff] }
  0x2d   :  { %717 = vmatpush3.msra.mxu1 %v249_v27  ;;  %683 = vmatprep.subr.mxu0 %v232_v28  ;;  %v244_v47 = vld [vmem:[#allocation5 + $0x120] sm:$0xff]  ;;  %v227_v48 = vld [vmem:[#allocation5 + $0x98] sm:$0xff]  ;;  %v44_v59 = vld [vmem:[#allocation2 + $0x8] sm:$0xff] }
  0x2e   :  { %718 = vmatprep.subr.mxu1 %v264_v29  ;;  %684 = vmatpush3.msra.mxu0 %v216_v30  ;;  %v259_v49 = vld [vmem:[#allocation5 + $0x198] sm:$0xff]  ;;  %v43_v51 = vld [vmem:[#allocation2] sm:$0xff]  ;;  %v48_v62 = vld [vmem:[#allocation2 + $0x28] sm:$0xff]  ;;  %v62_v1 = vunpack.c.h.bf16 %v44_v59  ;;  %v61_v15 = vunpack.c.l.bf16 %v44_v59 }
  0x2f   :  { %719 = vmatpush3.msra.mxu1 %v248_v31  ;;  %685 = vmatprep.subr.mxu0 %v231_v32  ;;  %v211_v50 = vld [vmem:[#allocation5 + $0x18] sm:$0xff]  ;;  %v47_v52 = vld [vmem:[#allocation2 + $0x20] sm:$0xff]  ;;  %v60_v56 = vunpack.c.h.bf16 %v43_v51  ;;  %v59_v60 = vunpack.c.l.bf16 %v43_v51  ;;  %v52_v63 = vld [vmem:[#allocation2 + $0x48] sm:$0xff]  ;;  %v70_v7 = vunpack.c.h.bf16 %v48_v62  ;;  %v69_v21 = vunpack.c.l.bf16 %v48_v62 }
  0x30   :  { %720 = vmatprep.subr.mxu1 %v263_v33  ;;  %686 = vmatpush3.msra.mxu0 %v215_v34  ;;  %v51_v53 = vld [vmem:[#allocation2 + $0x40] sm:$0xff]  ;;  %v243_v54 = vld [vmem:[#allocation5 + $0x118] sm:$0xff]  ;;  %v68_v57 = vunpack.c.h.bf16 %v47_v52  ;;  %v56_v0 = vld [vmem:[#allocation2 + $0x68] sm:$0xff]  ;;  %v67_v2 = vunpack.c.l.bf16 %v47_v52  ;;  %v78_v8 = vunpack.c.h.bf16 %v52_v63  ;;  %v77_v27 = vunpack.c.l.bf16 %v52_v63 }
  0x31   :  { %721 = vmatpush3.msra.mxu1 %v247_v35  ;;  %687 = vmatprep.subr.mxu0 %v230_v36  ;;  %v55_v55 = vld [vmem:[#allocation2 + $0x60] sm:$0xff]  ;;  %v76_v58 = vunpack.c.h.bf16 %v51_v53  ;;  %v75_v3 = vunpack.c.l.bf16 %v51_v53  ;;  %v226_v4 = vld [vmem:[#allocation5 + $0x90] sm:$0xff]  ;;  %v86_v9 = vunpack.c.h.bf16 %v56_v0  ;;  %v225_v16 = vld [vmem:[#allocation5 + $0x88] sm:$0xff]  ;;  %v112_v19 = vadd.f32 %v70_v7, %v62_v1 }
  0x32   :  { %722 = vmatprep.subr.mxu1 %v262_v37  ;;  %688 = vmatpush3.msra.mxu0 %v214_v38  ;;  %v84_v61 = vunpack.c.h.bf16 %v55_v55  ;;  %v258_v5 = vld [vmem:[#allocation5 + $0x190] sm:$0xff]  ;;  %v98_v6 = vadd.f32 %v68_v57, %v60_v56  ;;  %v83_v13 = vunpack.c.l.bf16 %v55_v55  ;;  %v91_v14 = vadd.f32 %v67_v2, %v59_v60  ;;  %v257_v17 = vld [vmem:[#allocation5 + $0x188] sm:$0xff]  ;;  %v224_v28 = vld [vmem:[#allocation5 + $0x80] sm:$0xff] }
  0x33   :  { %723 = vmatpush3.msra.mxu1 %v246_v39  ;;  %689 = vmatprep.subr.mxu0 %v229_v40  ;;  %v210_v10 = vld [vmem:[#allocation5 + $0x10] sm:$0xff]  ;;  %v171_v20 = vadd.f32 %v86_v9, %v78_v8  ;;  %v209_v22 = vld [vmem:[#allocation5 + $0x8] sm:$0xff]  ;;  %v256_v29 = vld [vmem:[#allocation5 + $0x180] sm:$0xff]  ;;  %v113_v31 = vrot.slane %v112_v19, 4  ;;  %v85_v33 = vunpack.c.l.bf16 %v56_v0  ;;  %v105_v39 = vadd.f32 %v69_v21, %v61_v15 }
  0x34   :  { %724 = vmatprep.subr.mxu1 %v261_v41  ;;  %690 = vmatpush3.msra.mxu0 %v213_v42  ;;  %v242_v11 = vld [vmem:[#allocation5 + $0x110] sm:$0xff]  ;;  %v157_v12 = vadd.f32 %v84_v61, %v76_v58  ;;  %v99_v18 = vrot.slane %v98_v6, 4  ;;  %v241_v23 = vld [vmem:[#allocation5 + $0x108] sm:$0xff]  ;;  %v92_v25 = vrot.slane %v91_v14, 4  ;;  %v150_v26 = vadd.f32 %v83_v13, %v75_v3  ;;  %v208_v34 = vld [vmem:[#allocation5] sm:$0xff] }
  0x35   :  { %725 = vmatpush3.msra.mxu1 %v245_v43  ;;  %691 = vmatprep.subr.mxu0 %v228_v44  ;;  %v172_v32 = vrot.slane %v171_v20, 4  ;;  %v240_v36 = vld [vmem:[#allocation5 + $0x100] sm:$0xff]  ;;  %v114_v41 = vadd.f32 %v113_v31, %v112_v19  ;;  %v164_v43 = vadd.f32 %v85_v33, %v77_v27  ;;  %v303_v44 = vld [vmem:[#allocation5 + $0x2f8] sm:$0xff]  ;;  %v856_v57 = vmov 0.0   ;;  %v53_v21 = vld [vmem:[#allocation2 + $0x50] sm:$0xff] }
  0x36   :  { %726 = vmatprep.subr.mxu1 %v260_v45  ;;  %692 = vmatpush3.msra.mxu0 %v212_v46  ;;  %v158_v24 = vrot.slane %v157_v12, 4  ;;  %v100_v30 = vadd.f32 %v99_v18, %v98_v6  ;;  %v93_v37 = vadd.f32 %v92_v25, %v91_v14  ;;  %v151_v38 = vrot.slane %v150_v26, 4  ;;  %v302_v27 = vld [vmem:[#allocation5 + $0x2f0] sm:$0xff] }
  0x37   :  { %727 = vmatpush3.msra.mxu1 %v244_v47  ;;  %693 = vmatprep.subr.mxu0 %v227_v48  ;;  %v173_v42 = vadd.f32 %v172_v32, %v171_v20  ;;  %v106_v48 = vrot.slane %v105_v39, 4  ;;  %v165_v52 = vrot.slane %v164_v43, 4  ;;  %v49_v20 = vld [vmem:[#allocation2 + $0x30] sm:$0xff] }
  0x38   :  { %728 = vmatprep.subr.mxu1 %v259_v49  ;;  %694 = vmatpush3.msra.mxu0 %v211_v50  ;;  %v159_v35 = vadd.f32 %v158_v24, %v157_v12  ;;  %v101_v40 = vrot.slane %v100_v30, 2  ;;  %v94_v46 = vrot.slane %v93_v37, 2  ;;  %v152_v47 = vadd.f32 %v151_v38, %v150_v26  ;;  %v286_v31 = vld [vmem:[#allocation5 + $0x270] sm:$0xff] }
  0x39   :  { %729 = vmatpush3.msra.mxu1 %v243_v54  ;;  %695 = vmatprep.subr.mxu0 %v226_v4  ;;  %v115_v50 = vrot.slane %v114_v41, 2  ;;  %v174_v51 = vrot.slane %v173_v42, 2  ;;  %v107_v56 = vadd.f32 %v106_v48, %v105_v39  ;;  %v166_v61 = vadd.f32 %v165_v52, %v164_v43  ;;  %v889_v43 = vld [vmem:[#allocation2 + $0x18] sm:$0xff]  ;;  %v284_v52 = vld [vmem:[#allocation5 + $0x260] sm:$0xff] }
  0x3a   :  { %730 = vmatprep.subr.mxu1 %v258_v5  ;;  %696 = vmatpush3.msra.mxu0 %v210_v10  ;;  %v160_v45 = vrot.slane %v159_v35, 2  ;;  %v102_v49 = vadd.f32 %v101_v40, %v100_v30  ;;  %v95_v54 = vadd.f32 %v94_v46, %v93_v37  ;;  %v153_v55 = vrot.slane %v152_v47, 2  ;;  %v285_v37 = vld [vmem:[#allocation5 + $0x268] sm:$0xff]  ;;  %v318_v46 = vld [vmem:[#allocation5 + $0x370] sm:$0xff] }
  0x3b   :  { %731 = vmatpush3.msra.mxu1 %v242_v11  ;;  %697 = vmatprep.subr.mxu0 %v225_v16  ;;  %v116_v59 = vadd.f32 %v115_v50, %v114_v41  ;;  %v175_v60 = vadd.f32 %v174_v51, %v173_v42  ;;  %v108_v1 = vrot.slane %v107_v56, 2  ;;  %v167_v5 = vrot.slane %v166_v61, 2  ;;  %v287_v16 = vld [vmem:[#allocation5 + $0x278] sm:$0xff] }
  0x3c   :  { %732 = vmatprep.subr.mxu1 %v257_v17  ;;  %698 = vmatpush3.msra.mxu0 %v209_v22  ;;  %v161_v53 = vadd.f32 %v160_v45, %v159_v35  ;;  %v103_v58 = vrot.slane %v102_v49, 1  ;;  %v96_v63 = vrot.slane %v95_v54, 1  ;;  %v154_v0 = vadd.f32 %v153_v55, %v152_v47  ;;  %v45_v17 = vld [vmem:[#allocation2 + $0x10] sm:$0xff]  ;;  %v319_v35 = vld [vmem:[#allocation5 + $0x378] sm:$0xff]  ;;  %v300_v47 = vld [vmem:[#allocation5 + $0x2e0] sm:$0xff] }
  0x3d   :  { %733 = vmatpush3.msra.mxu1 %v241_v23  ;;  %699 = vmatprep.subr.mxu0 %v224_v28  ;;  %v117_v3 = vrot.slane %v116_v59, 1  ;;  %v176_v4 = vrot.slane %v175_v60, 1  ;;  %v109_v9 = vadd.f32 %v108_v1, %v107_v56  ;;  %v168_v12 = vadd.f32 %v167_v5, %v166_v61  ;;  %v57_v22 = vld [vmem:[#allocation2 + $0x70] sm:$0xff]  ;;  %v893_v45 = vld [vmem:[#allocation2 + $0x58] sm:$0xff]  ;;  %v317_v55 = vld [vmem:[#allocation5 + $0x368] sm:$0xff] }
  0x3e   :  { %734 = vmatprep.subr.mxu1 %v256_v29  ;;  %700 = vmatpush3.msra.mxu0 %v208_v34  ;;  %v162_v62 = vrot.slane %v161_v53, 1  ;;  %v104_v2 = vadd.f32 %v103_v58, %v102_v49  ;;  %v97_v7 = vadd.f32 %v96_v63, %v95_v54  ;;  %v155_v8 = vrot.slane %v154_v0, 1  ;;  %v895_v49 = vld [vmem:[#allocation2 + $0x78] sm:$0xff] }
  0x3f   :  { %735 = vmatpush3.msra.mxu1 %v240_v36  ;;  %739 = vmatprep.subr.mxu0 %v303_v44  ;;  %v118_v10 = vadd.f32 %v117_v3, %v116_v59  ;;  %v177_v11 = vadd.f32 %v176_v4, %v175_v60  ;;  %v110_v15 = vrot.slane %v109_v9, 1  ;;  %v169_v19 = vrot.slane %v168_v12, 1  ;;  %v301_v36 = vld [vmem:[#allocation5 + $0x2e8] sm:$0xff]  ;;  %v891_v44 = vld [vmem:[#allocation2 + $0x38] sm:$0xff]  ;;  %v316_v3 = vld [vmem:[#allocation5 + $0x360] sm:$0xff] }
  0x40   :  { %579 = vmatprep.subr.mxu1 %v856_v57  ;;  %v163_v6 = vadd.f32 %v162_v62, %v161_v53  ;;  %v156_v14 = vadd.f32 %v155_v8, %v154_v0  ;;  %v64_v23 = vunpack.c.h.bf16 %v45_v17  ;;  %v63_v24 = vunpack.c.l.bf16 %v45_v17  ;;  %v299_v56 = vld [vmem:[#allocation5 + $0x2d8] sm:$0xff]  ;;  %v298_v4 = vld [vmem:[#allocation5 + $0x2d0] sm:$0xff] }
  0x41   :  { %v355_v18 = vsel %vm351_vm0, %v177_v11, %v118_v10  ;;  %v111_v26 = vadd.f32 %v110_v15, %v109_v9  ;;  %v72_v28 = vunpack.c.h.bf16 %v49_v20  ;;  %v80_v29 = vunpack.c.h.bf16 %v53_v21  ;;  %v283_v62 = vld [vmem:[#allocation5 + $0x258] sm:$0xff]  ;;  %v297_v10 = vld [vmem:[#allocation5 + $0x2c8] sm:$0xff]  ;;  %v314_v17 = vld [vmem:[#allocation5 + $0x350] sm:$0xff] }
  0x42   :  { %v353_v13 = vsel %vm351_vm0, %v163_v6, %v104_v2  ;;  %503 = vmatprep.mubr.f32.mxu1 %v355_v18  ;;  %v352_v25 = vsel %vm351_vm0, %v156_v14, %v97_v7  ;;  %v170_v30 = vadd.f32 %v169_v19, %v168_v12  ;;  %v88_v32 = vunpack.c.h.bf16 %v57_v22  ;;  %v282_v6 = vld [vmem:[#allocation5 + $0x250] sm:$0xff]  ;;  %v315_v9 = vld [vmem:[#allocation5 + $0x358] sm:$0xff]  ;;  %v296_v18 = vld [vmem:[#allocation5 + $0x2c0] sm:$0xff] }
  0x43   :  { %433 = vmatprep.mubr.f32.mxu0 %v353_v13  ;;  %v71_v33 = vunpack.c.l.bf16 %v49_v20  ;;  %v79_v34 = vunpack.c.l.bf16 %v53_v21  ;;  %v126_v38 = vadd.f32 %v72_v28, %v64_v23  ;;  %v87_v39 = vunpack.c.l.bf16 %v57_v22  ;;  %v281_v13 = vld [vmem:[#allocation5 + $0x248] sm:$0xff]  ;;  %v280_v20 = vld [vmem:[#allocation5 + $0x240] sm:$0xff]  ;;  %v295_v23 = vld [vmem:[#allocation5 + $0x2b8] sm:$0xff] }
  0x44   :  { %434 = vmatmul.mubr.f32.vlgmr.msra.gmra.mxu0 %v352_v25  ;;  %v354_v40 = vsel %vm351_vm0, %v170_v30, %v111_v26  ;;  %v185_v41 = vadd.f32 %v88_v32, %v80_v29  ;;  %v66_v50 = vunpack.c.h.bf16 %v889_v43  ;;  %v74_v51 = vunpack.c.h.bf16 %v891_v44  ;;  %v313_v22 = vld [vmem:[#allocation5 + $0x348] sm:$0xff]  ;;  %v279_v26 = vld [vmem:[#allocation5 + $0x238] sm:$0xff]  ;;  %v312_v29 = vld [vmem:[#allocation5 + $0x340] sm:$0xff] }
  0x45   :  { %740 = vmatpush3.msra.mxu0 %v287_v16  ;;  %v119_v42 = vadd.f32 %v71_v33, %v63_v24  ;;  %504 = vmatmul.mubr.f32.vlgmr.msra.gmra.mxu1 %v354_v40  ;;  %v178_v48 = vadd.f32 %v87_v39, %v79_v34  ;;  %v82_v53 = vunpack.c.h.bf16 %v893_v45  ;;  %v90_v54 = vunpack.c.h.bf16 %v895_v49  ;;  %v294_v30 = vld [vmem:[#allocation5 + $0x2b0] sm:$0xff]  ;;  %v293_v39 = vld [vmem:[#allocation5 + $0x2a8] sm:$0xff] }
  0x46   :  { %741 = vmatprep.subr.mxu0 %v302_v27  ;;  %580 = vmatpush1.msra.mxu1 %v319_v35  ;;  %v127_v58 = vrot.slane %v126_v38, 4  ;;  %v186_v59 = vrot.slane %v185_v41, 4  ;;  %v141_v60 = vsel %vm140_vm1, %v66_v50, 0.0  ;;  %v142_v61 = vsel %vm140_vm1, %v74_v51, 0.0  ;;  %v278_v33 = vld [vmem:[#allocation5 + $0x230] sm:$0xff] }
  0x47   :  { %742 = vmatpush3.msra.mxu0 %v286_v31  ;;  %581 = vmatprep.subr.mxu1 %v856_v57  ;;  %v120_v63 = vrot.slane %v119_v42, 4  ;;  %v179_v0 = vrot.slane %v178_v48, 4  ;;  %v143_v1 = vadd.f32 %v142_v61, %v141_v60  ;;  %v199_v2 = vsel %vm140_vm1, %v82_v53, 0.0  ;;  %v291_v53 = vld [vmem:[#allocation5 + $0x298] sm:$0xff]  ;;  %v308_v60 = vld [vmem:[#allocation5 + $0x320] sm:$0xff]  ;;  %v290_v61 = vld [vmem:[#allocation5 + $0x290] sm:$0xff] }
  0x48   :  { %743 = vmatprep.subr.mxu0 %v301_v36  ;;  %582 = vmatpush1.msra.mxu1 %v318_v46  ;;  %v200_v5 = vsel %vm140_vm1, %v90_v54, 0.0  ;;  %v128_v11 = vadd.f32 %v127_v58, %v126_v38  ;;  %v187_v12 = vadd.f32 %v186_v59, %v185_v41  ;;  %v65_v34 = vunpack.c.l.bf16 %v889_v43  ;;  %v311_v38 = vld [vmem:[#allocation5 + $0x338] sm:$0xff]  ;;  %v310_v43 = vld [vmem:[#allocation5 + $0x330] sm:$0xff] }
  0x49   :  { %744 = vmatpush3.msra.mxu0 %v285_v37  ;;  %583 = vmatprep.subr.mxu1 %v856_v57  ;;  %v144_v7 = vrot.slane %v143_v1, 4  ;;  %v201_v8 = vadd.f32 %v200_v5, %v199_v2  ;;  %v121_v14 = vadd.f32 %v120_v63, %v119_v42  ;;  %v180_v15 = vadd.f32 %v179_v0, %v178_v48  ;;  %v277_v42 = vld [vmem:[#allocation5 + $0x228] sm:$0xff]  ;;  %v274_v0 = vld [vmem:[#allocation5 + $0x210] sm:$0xff] }
  0x4a   :  { %745 = vmatprep.subr.mxu0 %v300_v47  ;;  %584 = vmatpush1.msra.mxu1 %v317_v55  ;;  %v129_v24 = vrot.slane %v128_v11, 2  ;;  %v188_v25 = vrot.slane %v187_v12, 2  ;;  %v73_v35 = vunpack.c.l.bf16 %v891_v44  ;;  %v81_v36 = vunpack.c.l.bf16 %v893_v45  ;;  %v292_v44 = vld [vmem:[#allocation5 + $0x2a0] sm:$0xff] }
  0x4b   :  { %746 = vmatpush3.msra.mxu0 %v284_v52  ;;  %585 = vmatprep.subr.mxu1 %v856_v57  ;;  %v202_v16 = vrot.slane %v201_v8, 4  ;;  %v145_v19 = vadd.f32 %v144_v7, %v143_v1  ;;  %v122_v27 = vrot.slane %v121_v14, 2  ;;  %v181_v28 = vrot.slane %v180_v15, 2  ;;  %v309_v52 = vld [vmem:[#allocation5 + $0x328] sm:$0xff] }
  0x4c   :  { %747 = vmatprep.subr.mxu0 %v299_v56  ;;  %586 = vmatpush1.msra.mxu1 %v316_v3  ;;  %v89_v37 = vunpack.c.l.bf16 %v895_v49  ;;  %v130_v40 = vadd.f32 %v129_v24, %v128_v11  ;;  %v189_v41 = vadd.f32 %v188_v25, %v187_v12  ;;  %v276_v49 = vld [vmem:[#allocation5 + $0x220] sm:$0xff]  ;;  %v133_v50 = vadd.f32 %v73_v35, %v65_v34  ;;  %v275_v56 = vld [vmem:[#allocation5 + $0x218] sm:$0xff]  ;;  %v273_v7 = vld [vmem:[#allocation5 + $0x208] sm:$0xff] }
  0x4d   :  { %748 = vmatpush3.msra.mxu0 %v283_v62  ;;  %587 = vmatprep.subr.mxu1 %v856_v57  ;;  %v203_v21 = vadd.f32 %v202_v16, %v201_v8  ;;  %v146_v31 = vrot.slane %v145_v19, 2  ;;  %v123_v46 = vadd.f32 %v122_v27, %v121_v14  ;;  %v182_v47 = vadd.f32 %v181_v28, %v180_v15  ;;  %v307_v3 = vld [vmem:[#allocation5 + $0x318] sm:$0xff]  ;;  %v288_v11 = vld [vmem:[#allocation5 + $0x280] sm:$0xff]  ;;  %v326_v25 = vld [vmem:[#allocation5 + $0x3b0] sm:$0xff] }
  0x4e   :  { %749 = vmatprep.subr.mxu0 %v298_v4  ;;  %588 = vmatpush1.msra.mxu1 %v315_v9  ;;  %v192_v51 = vadd.f32 %v89_v37, %v81_v36  ;;  %v131_v54 = vrot.slane %v130_v40, 1  ;;  %v190_v55 = vrot.slane %v189_v41, 1  ;;  %v134_v1 = vrot.slane %v133_v50, 4  ;;  %v289_v4 = vld [vmem:[#allocation5 + $0x288] sm:$0xff]  ;;  %v272_v14 = vld [vmem:[#allocation5 + $0x200] sm:$0xff]  ;;  %v327_v24 = vld [vmem:[#allocation5 + $0x3b8] sm:$0xff] }
  0x4f   :  { %750 = vmatpush3.msra.mxu0 %v282_v6  ;;  %589 = vmatprep.subr.mxu1 %v856_v57  ;;  %v204_v32 = vrot.slane %v203_v21, 2  ;;  %v147_v45 = vadd.f32 %v146_v31, %v145_v19  ;;  %v124_v58 = vrot.slane %v123_v46, 1  ;;  %v183_v59 = vrot.slane %v182_v47, 1  ;;  %v325_v28 = vld [vmem:[#allocation5 + $0x3a8] sm:$0xff]  ;;  %v320_v37 = vld [vmem:[#allocation5 + $0x380] sm:$0xff] }
  0x50   :  { %751 = vmatprep.subr.mxu0 %v297_v10  ;;  %590 = vmatpush1.msra.mxu1 %v314_v17  ;;  %v193_v2 = vrot.slane %v192_v51, 4  ;;  %v132_v5 = vadd.f32 %v131_v54, %v130_v40  ;;  %v191_v6 = vadd.f32 %v190_v55, %v189_v41  ;;  %v306_v10 = vld [vmem:[#allocation5 + $0x310] sm:$0xff]  ;;  %v135_v15 = vadd.f32 %v134_v1, %v133_v50  ;;  %v305_v17 = vld [vmem:[#allocation5 + $0x308] sm:$0xff] }
  0x51   :  { %752 = vmatpush3.msra.mxu0 %v281_v13  ;;  %591 = vmatprep.subr.mxu1 %v856_v57  ;;  %v205_v48 = vadd.f32 %v204_v32, %v203_v21  ;;  %v148_v62 = vrot.slane %v147_v45, 1  ;;  %v125_v8 = vadd.f32 %v124_v58, %v123_v46  ;;  %v184_v9 = vadd.f32 %v183_v59, %v182_v47  ;;  %v323_v32 = vld [vmem:[#allocation5 + $0x398] sm:$0xff]  ;;  %v321_v36 = vld [vmem:[#allocation5 + $0x388] sm:$0xff]  ;;  %v667_v47 = vld [vmem:[%s945_s2] ss:$0 sm:$0xff] }
  0x52   :  { %753 = vmatprep.subr.mxu0 %v296_v18  ;;  %592 = vmatpush1.msra.mxu1 %v313_v22  ;;  %v194_v16 = vadd.f32 %v193_v2, %v192_v51  ;;  %v357_v18 = vsel %vm351_vm0, %v191_v6, %v132_v5  ;;  %v136_v22 = vrot.slane %v135_v15, 2 }
  0x53   :  { %754 = vmatpush3.msra.mxu0 %v280_v20  ;;  %593 = vmatprep.subr.mxu1 %v856_v57  ;;  %v206_v63 = vrot.slane %v205_v48, 1  ;;  %v149_v12 = vadd.f32 %v148_v62, %v147_v45  ;;  %v356_v19 = vsel %vm351_vm0, %v184_v9, %v125_v8  ;;  %v304_v20 = vld [vmem:[#allocation5 + $0x300] sm:$0xff] }
  0x54   :  { %755 = vmatprep.subr.mxu0 %v295_v23  ;;  %594 = vmatpush1.msra.mxu1 %v312_v29  ;;  %v195_v23 = vrot.slane %v194_v16, 2  ;;  %v324_v29 = vld [vmem:[#allocation5 + $0x3a0] sm:$0xff] }
  0x55   :  { %756 = vmatpush3.msra.mxu0 %v279_v26  ;;  %595 = vmatprep.subr.mxu1 %v856_v57  ;;  %v207_v13 = vadd.f32 %v206_v63, %v205_v48  ;;  %v137_v26 = vadd.f32 %v136_v22, %v135_v15 }
  0x56   :  { %757 = vmatprep.subr.mxu0 %v294_v30  ;;  %596 = vmatpush1.msra.mxu1 %v311_v38  ;;  %v196_v27 = vadd.f32 %v195_v23, %v194_v16 }
  0x57   :  { %758 = vmatpush3.msra.mxu0 %v278_v33  ;;  %597 = vmatprep.subr.mxu1 %v856_v57  ;;  %v359_v21 = vsel %vm351_vm0, %v207_v13, %v149_v12  ;;  %v138_v30 = vrot.slane %v137_v26, 1  ;;  %v322_v33 = vld [vmem:[#allocation5 + $0x390] sm:$0xff] }
  0x58   :  { %759 = vmatprep.subr.mxu0 %v293_v39  ;;  %598 = vmatpush1.msra.mxu1 %v310_v43  ;;  %v197_v31 = vrot.slane %v196_v27, 1 }
  0x59   :  { %760 = vmatpush3.msra.mxu0 %v277_v42  ;;  %599 = vmatprep.subr.mxu1 %v856_v57  ;;  %v139_v34 = vadd.f32 %v138_v30, %v137_v26 }
  0x5a   :  { %761 = vmatprep.subr.mxu0 %v292_v44  ;;  %600 = vmatpush1.msra.mxu1 %v309_v52  ;;  %v198_v35 = vadd.f32 %v197_v31, %v196_v27 }
  0x5b   :  { %762 = vmatpush3.msra.mxu0 %v276_v49  ;;  %601 = vmatprep.subr.mxu1 %v856_v57 }
  0x5c   :  { %763 = vmatprep.subr.mxu0 %v291_v53  ;;  %602 = vmatpush1.msra.mxu1 %v308_v60  ;;  %v358_v38 = vsel %vm351_vm0, %v198_v35, %v139_v34 }
  0x5d   :  { %764 = vmatpush3.msra.mxu0 %v275_v56  ;;  %603 = vmatprep.subr.mxu1 %v856_v57 }
  0x5e   :  { %765 = vmatprep.subr.mxu0 %v290_v61  ;;  %604 = vmatpush1.msra.mxu1 %v307_v3 }
  0x5f   :  { %766 = vmatpush3.msra.mxu0 %v274_v0  ;;  %605 = vmatprep.subr.mxu1 %v856_v57 }
  0x60   :  { %767 = vmatprep.subr.mxu0 %v289_v4  ;;  %606 = vmatpush1.msra.mxu1 %v306_v10 }
  0x61   :  { %768 = vmatpush3.msra.mxu0 %v273_v7  ;;  %607 = vmatprep.subr.mxu1 %v856_v57 }
  0x62   :  { %769 = vmatprep.subr.mxu0 %v288_v11  ;;  %608 = vmatpush1.msra.mxu1 %v305_v17 }
  0x63   :  { %770 = vmatpush3.msra.mxu0 %v272_v14  ;;  %573 = vmatprep.mubr.f32.mxu0 %v357_v18 }
  0x64   :  { %609 = vmatprep.subr.mxu1 %v856_v57  ;;  %574 = vmatmul.mubr.f32.vlgmr.msra.gmra.mxu0 %v356_v19 }
  0x65   :  { %610 = vmatpush1.msra.mxu1 %v304_v20  ;;  %668 = vmatprep.mubr.msk.f32.mxu1 %vm140_vm1, %v359_v21 }
  0x66   :  { %627 = vmatprep.subr.mxu1 %v856_v57 }
  0x67   :  { %628 = vmatpush2.msra.mxu1 %v327_v24 }
  0x68   :  { %629 = vmatprep.subr.mxu1 %v856_v57 }
  0x69   :  { %630 = vmatpush2.msra.mxu1 %v326_v25 }
  0x6a   :  { %631 = vmatprep.subr.mxu1 %v856_v57 }
  0x6b   :  { %632 = vmatpush2.msra.mxu1 %v325_v28 }
  0x6c   :  { %633 = vmatprep.subr.mxu1 %v856_v57 }
  0x6d   :  { %634 = vmatpush2.msra.mxu1 %v324_v29 }
  0x6e   :  { %635 = vmatprep.subr.mxu1 %v856_v57 }
  0x6f   :  { %636 = vmatpush2.msra.mxu1 %v323_v32 }
  0x70   :  { %637 = vmatprep.subr.mxu1 %v856_v57 }
  0x71   :  { %638 = vmatpush2.msra.mxu1 %v322_v33 }
  0x72   :  { %639 = vmatprep.subr.mxu1 %v856_v57 }
  0x73   :  { %640 = vmatpush2.msra.mxu1 %v321_v36 }
  0x74   :  { %641 = vmatprep.subr.mxu1 %v856_v57 }
  0x75   :  { %642 = vmatpush2.msra.mxu1 %v320_v37 }
  0x76   :  { %644 = vmatmul.mubr.f32.vlgmr.msra.gmra.mxu1 %v358_v38 }
 0x104   :  { %v701_v39 = vpop.f32.mrf.mxu0 }
 0x105   :  { %v736_v41 = vpop.f32.mrf.mxu1 }
 0x106   :  { %v702_v40 = vpop.f32.mrf.mxu0 }
 0x107   :  { %v703_v46 = vadd.f32 %v702_v40, %v701_v39  ;;  %v737_v43 = vpop.f32.mrf.mxu1 }
 0x108   :  { %v738_v48 = vadd.f32 %v737_v43, %v736_v41 }
 0x109   :  { %v436_v45 = vadd.f32 %v703_v46, %v667_v47 }
 0x10b   :  { %v506_v50 = vadd.f32 %v738_v48, %v436_v45 }
 0x124   :  { %v771_v42 = vpop.f32.mrf.mxu0 }
 0x126   :  { %v772_v44 = vpop.f32.mrf.mxu0 }
 0x127   :  { %v773_v49 = vadd.f32 %v772_v44, %v771_v42 }
 0x129   :  { %v576_v51 = vadd.f32 %v773_v49, %v506_v50 }
 0x136   :  { %v645_v52 = vpop.f32.mrf.mxu1 }
 0x137   :  { %v646_v57 = vadd.f32 %v645_v52, %v576_v51 }
 0x138   :  { %v647_v53 = vpop.f32.mrf.mxu1 }
 0x139   :  { %782 = vtanh.f32 %v646_v57 }
 0x146   :  { %v783_v54 = vpop.eup %782 }
 0x147   :  { %650 = vst [vmem:[#allocation7] sm:$0x3] %v783_v54 }
 0x148   :  { %835 = shalt.err (!%p832_p0)
}
 0x149   :  { %660 = dma.vmem_to_hbm [thread:$0]  %s658_s27, 32, %s946_s3, [#allocation4]  }
 0x14a   :  { %848 = dma.done.wait [#allocation4], 32  }
 0x14b   :  { %849 = vsyncadd [#allocation4], 4294967264 }
 0x14c   :  { %664 = vsyncpa [#allocation3], 1 }
 0x14d   :  { %665 = vsyncpa [#allocation6], 1 }
 0x14e   :  { %666 = vsyncpa [#allocation4], 1 }

</bundles_post_ra>
